<compile_context>
chip_gen: v6e
topology: v6e:2x2x1
jax: 0.10.0
libtpu: 0.0.40
codegen_flags: <defaults>
</compile_context>

<pallas_src>
import jax
import jax.numpy as jnp
from jax.experimental import pallas as pl
from jax.experimental.pallas import tpu as pltpu


def _round_up(v, m):
    return -(-v // m) * m


def _pick_tile(hp):
    # Largest MXU-friendly tile in {512, 256, 128} that divides the padded dim.
    if hp % 512 == 0:
        return min(512, hp)
    if hp % 256 == 0:
        return min(256, hp)
    return 128


def _residual_linear_kernel_single_k(x_mm_ref, w_ref, b_ref, x_res_ref, o_ref):
    # Whole K fits in one tile: matmul + bias + residual + store, no scratch.
    y = jnp.dot(x_mm_ref[...], w_ref[...], preferred_element_type=jnp.float32)
    y = y + b_ref[...].astype(jnp.float32)
    y = y + x_res_ref[...].astype(jnp.float32)
    o_ref[...] = y.astype(o_ref.dtype)


def _residual_linear_kernel_tiled(x_mm_ref, w_ref, b_ref, x_res_ref, o_ref, acc_ref):
    k = pl.program_id(2)

    @pl.when(k == 0)
    def _init():
        # Fold the bias into the accumulator init (added exactly once).
        acc_ref[...] = jnp.broadcast_to(
            b_ref[...].astype(jnp.float32), acc_ref.shape
        )

    # MXU matmul on the (tm, tk) x (tk, tn) tiles, accumulated in f32.
    acc_ref[...] += jnp.dot(
        x_mm_ref[...], w_ref[...], preferred_element_type=jnp.float32
    )

    @pl.when(k == pl.num_programs(2) - 1)
    def _finish():
        y = acc_ref[...] + x_res_ref[...].astype(jnp.float32)       # residual, once
        o_ref[...] = y.astype(o_ref.dtype)


def residual_forward(x, w, b, *, use_bf16=None):
    """Residual(Linear) forward: fn(x) + x.

    x: (B, S, H)   w: (H, H)   b: (H,)   ->   (B, S, H)
    """
    B, S, H = x.shape
    M = B * S
    orig_dtype = x.dtype

    if use_bf16 is None:
        # Compute-bound regime (large H): feed the MXU bf16, accumulate in f32.
        use_bf16 = H >= 1024

    # ---- padding for lane-dense, MXU-aligned tiles ----
    Hp = _round_up(H, 128)
    tn = _pick_tile(Hp)          # output-H tile (lane-dense, multiple of 128)
    tk = _pick_tile(Hp)          # reduction tile (streams W through VMEM)
    Mp8 = _round_up(max(M, 1), 8)
    tm = min(256, Mp8)           # row tile (sublane-aligned)
    Mp = _round_up(M, tm)

    x2d = x.reshape(M, H)
    xp = x2d
    if Mp != M or Hp != H:
        xp = jnp.pad(x2d, ((0, Mp - M), (0, Hp - H)))
    wp = w if Hp == H else jnp.pad(w, ((0, Hp - H), (0, Hp - H)))
    bp = (b if Hp == H else jnp.pad(b, (0, Hp - H))).reshape(1, Hp)

    mm_dtype = jnp.bfloat16 if use_bf16 else xp.dtype
    x_mm = xp.astype(mm_dtype)
    w_mm = wp.astype(mm_dtype)

    n_k = Hp // tk

    itemsize = jnp.dtype(orig_dtype).itemsize
    cost = pl.CostEstimate(
        flops=2 * Mp * Hp * Hp,
        transcendentals=0,
        bytes_accessed=itemsize * (2 * Mp * Hp + Hp * Hp + Hp)
        + jnp.dtype(mm_dtype).itemsize * (Mp * Hp + Hp * Hp),
    )

    if n_k == 1:
        # -------- single-K fast path: 2-D grid, no accumulator scratch --------
        grid = (Mp // tm, Hp // tn)
        out_p = pl.pallas_call(
            _residual_linear_kernel_single_k,
            out_shape=jax.ShapeDtypeStruct((Mp, Hp), orig_dtype),
            grid_spec=pltpu.PrefetchScalarGridSpec(
                num_scalar_prefetch=0,
                grid=grid,
                in_specs=[
                    # x for the matmul: full K in one tile
                    pl.BlockSpec((tm, tk), lambda i, j: (i, 0)),
                    # W: indexed by the N tile only
                    pl.BlockSpec((tk, tn), lambda i, j: (0, j)),
                    # bias: one (1, tn) block per N tile
                    pl.BlockSpec((1, tn), lambda i, j: (0, j)),
                    # x for the residual add: aligned with the output tile
                    pl.BlockSpec((tm, tn), lambda i, j: (i, j)),
                ],
                out_specs=pl.BlockSpec((tm, tn), lambda i, j: (i, j)),
            ),
            compiler_params=pltpu.CompilerParams(
                dimension_semantics=("parallel", "parallel")
            ),
            cost_estimate=cost,
        )(x_mm, w_mm, bp, xp)
    else:
        # -------- tiled reduction path: 3-D grid, f32 accumulator scratch --------
        grid = (Mp // tm, Hp // tn, n_k)
        out_p = pl.pallas_call(
            _residual_linear_kernel_tiled,
            out_shape=jax.ShapeDtypeStruct((Mp, Hp), orig_dtype),
            grid_spec=pltpu.PrefetchScalarGridSpec(
                num_scalar_prefetch=0,
                grid=grid,
                in_specs=[
                    # x for the matmul: streams over the K axis
                    pl.BlockSpec((tm, tk), lambda i, j, k: (i, k)),
                    # W: streams over K, indexed by the N tile
                    pl.BlockSpec((tk, tn), lambda i, j, k: (k, j)),
                    # bias: one (1, tn) block per N tile, constant across K
                    pl.BlockSpec((1, tn), lambda i, j, k: (0, j)),
                    # x for the residual add: aligned with the output tile
                    pl.BlockSpec((tm, tn), lambda i, j, k: (i, j)),
                ],
                out_specs=pl.BlockSpec((tm, tn), lambda i, j, k: (i, j)),
                scratch_shapes=[pltpu.VMEM((tm, tn), jnp.float32)],
            ),
            compiler_params=pltpu.CompilerParams(
                dimension_semantics=("parallel", "parallel", "arbitrary")
            ),
            cost_estimate=cost,
        )(x_mm, w_mm, bp, xp)

    return out_p[:M, :H].reshape(B, S, H)


if __name__ == "__main__":
    key = jax.random.PRNGKey(0)
    kx, kw, kb = jax.random.split(key, 3)

    B, S, H = 2, 8, 32
    x = jax.random.normal(kx, (B, S, H), dtype=jnp.float32)
    # Deterministic synthetic parameters for fn = Linear(H, H)
    w = jax.random.normal(kw, (H, H), dtype=jnp.float32) * 0.05
    b = jax.random.normal(kb, (H,), dtype=jnp.float32) * 0.01

    out = residual_forward(x, w, b)
    jax.block_until_ready(out)

    # Pure-JAX reference of the residual semantics: fn(x) + x
    ref = (jnp.einsum("bsh,hk->bsk", x, w) + b) + x
    assert out.shape == (B, S, H)
    assert jnp.allclose(out, ref, atol=1e-5, rtol=1e-5)

    # Also exercise the tiled (multi-K) path at a larger hidden size.
    H2 = 384
    x2 = jax.random.normal(kx, (B, S, H2), dtype=jnp.float32)
    w2 = jax.random.normal(kw, (H2, H2), dtype=jnp.float32) * 0.02
    b2 = jax.random.normal(kb, (H2,), dtype=jnp.float32) * 0.01
    out2 = residual_forward(x2, w2, b2, use_bf16=False)
    jax.block_until_ready(out2)
    ref2 = (jnp.einsum("bsh,hk->bsk", x2, w2) + b2) + x2
    assert jnp.allclose(out2, ref2, atol=1e-4, rtol=1e-4)

    print("KERNEL_OK")
</pallas_src>

<mosaic_0001>
module attributes {stable_mosaic.version = 11 : i64} {
  func.func @_residual_linear_kernel_single_k(%arg0: i32, %arg1: i32, %arg2: memref<16x128xf32, #tpu.memory_space<vmem>>, %arg3: memref<128x128xf32, #tpu.memory_space<vmem>>, %arg4: memref<1x128xf32, #tpu.memory_space<vmem>>, %arg5: memref<16x128xf32, #tpu.memory_space<vmem>>, %arg6: memref<16x128xf32, #tpu.memory_space<vmem>>) attributes {dimension_semantics = [#tpu.dimension_semantics<parallel>, #tpu.dimension_semantics<parallel>], iteration_bounds = array<i64: 1, 1>, scalar_prefetch = 0 : i64, scratch_operands = 0 : i64, tpu.core_type = #tpu.core_type<tc>, window_params = [{transform_indices = @transform_0, window_bounds = array<i64: 16, 128>}, {transform_indices = @transform_1, window_bounds = array<i64: 128, 128>}, {transform_indices = @transform_2, window_bounds = array<i64: 1, 128>}, {transform_indices = @transform_3, window_bounds = array<i64: 16, 128>}, {transform_indices = @transform_4, window_bounds = array<i64: 16, 128>}]} {
    %c0 = arith.constant 0 : index
    %c0_0 = arith.constant 0 : index
    %0 = vector.load %arg2[%c0, %c0_0] : memref<16x128xf32, #tpu.memory_space<vmem>>, vector<16x128xf32>
    %c0_1 = arith.constant 0 : index
    %c0_2 = arith.constant 0 : index
    %1 = vector.load %arg3[%c0_1, %c0_2] : memref<128x128xf32, #tpu.memory_space<vmem>>, vector<128x128xf32>
    %cst = arith.constant dense<0.000000e+00> : vector<16x128xf32>
    %2 = tpu.matmul %0, %1, %cst {dimension_numbers = #tpu.dot_dimension_numbers<[1], [0], [0], [1], [0, 0, 1, 1], [], []>} : vector<16x128xf32>, vector<128x128xf32>, vector<16x128xf32> -> vector<16x128xf32>
    %c0_3 = arith.constant 0 : index
    %c0_4 = arith.constant 0 : index
    %3 = vector.load %arg4[%c0_3, %c0_4] : memref<1x128xf32, #tpu.memory_space<vmem>>, vector<1x128xf32>
    %4 = vector.broadcast %3 : vector<1x128xf32> to vector<16x128xf32>
    %5 = arith.addf %2, %4 : vector<16x128xf32>
    %c0_5 = arith.constant 0 : index
    %c0_6 = arith.constant 0 : index
    %6 = vector.load %arg5[%c0_5, %c0_6] : memref<16x128xf32, #tpu.memory_space<vmem>>, vector<16x128xf32>
    %7 = arith.addf %5, %6 : vector<16x128xf32>
    %c0_7 = arith.constant 0 : index
    %c0_8 = arith.constant 0 : index
    %8 = vector.load %arg6[%c0_7, %c0_8] : memref<16x128xf32, #tpu.memory_space<vmem>>, vector<16x128xf32>
    tpu.vector_store %arg6[%c0_7, %c0_8], %7 {strides = array<i32>} : memref<16x128xf32, #tpu.memory_space<vmem>>, vector<16x128xf32>,
    return
  }
  func.func @transform_0(%arg0: i32, %arg1: i32) -> (i32, i32) {
    %c0_i32 = arith.constant 0 : i32
    %c0_i32_0 = arith.constant 0 : i32
    return %arg0, %c0_i32 : i32, i32
  }
  func.func @transform_1(%arg0: i32, %arg1: i32) -> (i32, i32) {
    %c0_i32 = arith.constant 0 : i32
    %c0_i32_0 = arith.constant 0 : i32
    return %c0_i32, %arg1 : i32, i32
  }
  func.func @transform_2(%arg0: i32, %arg1: i32) -> (i32, i32) {
    %c0_i32 = arith.constant 0 : i32
    %c0_i32_0 = arith.constant 0 : i32
    return %c0_i32, %arg1 : i32, i32
  }
  func.func @transform_3(%arg0: i32, %arg1: i32) -> (i32, i32) {
    %c0_i32 = arith.constant 0 : i32
    return %arg0, %arg1 : i32, i32
  }
  func.func @transform_4(%arg0: i32, %arg1: i32) -> (i32, i32) {
    %c0_i32 = arith.constant 0 : i32
    return %arg0, %arg1 : i32, i32
  }
}

</mosaic_0001>

<bundles_post_ra>
// kernel: tpu_custom_call.1
= control target key start
LH: loop header
LB: loop body
LE: loop exit
PB: predicated region body
PF: predicated region fallthrough
CT: control target
= control target key end

     0   :  { %9 = vsyncpa [#allocation3], 0  ;;  %s387_s0 = inlined_call_operand.hbm [shape: f32[16,128], index: 0, kind: input, shape index: {}]   ;;  %s388_s1 = inlined_call_operand.hbm [shape: f32[128,128], index: 1, kind: input, shape index: {}]   ;;  %s389_s2 = inlined_call_operand.vmem [shape: f32[1,128], index: 2, kind: input, shape index: {}]   ;;  %s390_s3 = inlined_call_operand.hbm [shape: f32[16,128], index: 3, kind: input, shape index: {}]   ;;  %s391_s4 = inlined_call_operand.hbm [shape: f32[16,128], index: 4, kind: output, shape index: {}]  }
   0x1   :  { %10 = vsyncpa [#allocation6], 0 }
   0x2   :  { %11 = vsyncpa [#allocation4], 0  ;;  %s329_s15 = smov [#allocation5]   ;;  %s330_s17 = smov [#allocation2]  }
   0x3   :  { %s29_s16 = sshll.u32 %s329_s15, 4  ;;  %s17_s18 = sshll.u32 %s330_s17, 4  ;;  %s30_s16 = int_to_ptr.vmem [resolvable:$true] %s29_s16  ;;  %s18_s18 = int_to_ptr.vmem [resolvable:$true] %s17_s18 }
   0x4   :  { %s251_s19 = scalar_lea.vmem %s30_s16, 2048  ;;  %p256_p1 = scmp.lt.s32.totalorder %s30_s16, %s30_s16 }
   0x5   :  { %p252_p0 = scmp.ne.s32.totalorder %s30_s16, %s251_s19  ;;  %p257_p2 = scmp.lt.s32.totalorder %s251_s19, %s251_s19 }
   0x7   :  { %p258_p3 = por %p257_p2, %p256_p1 }
   0x9   :  { %p259_p4 = pnand %p258_p3, %p252_p0 }
   0xb   :  { %262 = shalt.err (!%p259_p4)
}
   0xc   :  { %s331_s20 = smov 128   ;;  %s332_s21 = smov 8  }
   0xd   :  { %35 = dma.hbm_to_vmem [thread:$0]  %s388_s1, 2048, %s30_s16, [#allocation6], %s331_s20, %s331_s20, %s332_s21  }
   0xe   :  { %s271_s24 = scalar_lea.vmem %s18_s18, 256  ;;  %p276_p6 = scmp.lt.s32.totalorder %s18_s18, %s18_s18 }
   0xf   :  { %p272_p5 = scmp.ne.s32.totalorder %s18_s18, %s271_s24  ;;  %p277_p7 = scmp.lt.s32.totalorder %s271_s24, %s271_s24 }
  0x11   :  { %p278_p8 = por %p277_p7, %p276_p6 }
  0x13   :  { %p279_p9 = pnand %p278_p8, %p272_p5 }
  0x15   :  { %282 = shalt.err (!%p279_p9)
}
  0x16   :  { %23 = dma.hbm_to_vmem [thread:$0]  %s387_s0, 256, %s18_s18, [#allocation3], %s331_s20, %s331_s20, %s332_s21  }
  0x17   :  { %s333_s27 = smov [#allocation7]  }
  0x18   :  { %s43_s28 = sshll.u32 %s333_s27, 4  ;;  %s44_s28 = int_to_ptr.vmem [resolvable:$true] %s43_s28 }
  0x19   :  { %s291_s29 = scalar_lea.vmem %s44_s28, 256  ;;  %p296_p11 = scmp.lt.s32.totalorder %s44_s28, %s44_s28 }
  0x1a   :  { %p292_p10 = scmp.ne.s32.totalorder %s44_s28, %s291_s29  ;;  %p297_p12 = scmp.lt.s32.totalorder %s291_s29, %s291_s29 }
  0x1c   :  { %p298_p13 = por %p297_p12, %p296_p11 }
  0x1e   :  { %p299_p0 = pnand %p298_p13, %p292_p10 }
  0x20   :  { %302 = shalt.err (!%p299_p0)
}
  0x21   :  { %49 = dma.hbm_to_vmem [thread:$0]  %s390_s3, 256, %s44_s28, [#allocation6], %s331_s20, %s331_s20, %s332_s21  }
  0x22   :  { %323 = dma.done.wait [#allocation3], 256  }
  0x23   :  { %324 = vsyncadd [#allocation3], 4294967040 }
  0x24   :  { %325 = dma.done.wait [#allocation6], 2304  }
  0x25   :  { %326 = vsyncadd [#allocation6], 4294964992  ;;  %v76_v0 = vld [vmem:[#allocation5 + $0x78] sm:$0xff]  ;;  %v75_v1 = vld [vmem:[#allocation5 + $0x70] sm:$0xff]  ;;  %s334_s5 = smov [#allocation8]  }
  0x26   :  { %202 = vmatprep.subr.mxu0 %v76_v0  ;;  %v74_v2 = vld [vmem:[#allocation5 + $0x68] sm:$0xff]  ;;  %v73_v3 = vld [vmem:[#allocation5 + $0x60] sm:$0xff]  ;;  %v59_v4 = vld [vmem:[#allocation2] sm:$0xff]  ;;  %s170_s6 = sshll.u32 %s334_s5, 4  ;;  %s171_s6 = int_to_ptr.vmem [resolvable:$true] %s170_s6 }
  0x27   :  { %203 = vmatpush3.msra.mxu0 %v76_v0  ;;  %v72_v5 = vld [vmem:[#allocation5 + $0x58] sm:$0xff]  ;;  %234 = vmatprep.mubr.f32.mxu0 %v59_v4  ;;  %v71_v6 = vld [vmem:[#allocation5 + $0x50] sm:$0xff]  ;;  %v70_v7 = vld [vmem:[#allocation5 + $0x48] sm:$0xff]  ;;  %s303_s7 = scalar_lea.vmem %s171_s6, 256  ;;  %p308_p2 = scmp.lt.s32.totalorder %s171_s6, %s171_s6 }
  0x28   :  { %204 = vmatprep.subr.mxu0 %v75_v1  ;;  %v69_v8 = vld [vmem:[#allocation5 + $0x40] sm:$0xff]  ;;  %v68_v9 = vld [vmem:[#allocation5 + $0x38] sm:$0xff]  ;;  %v67_v10 = vld [vmem:[#allocation5 + $0x30] sm:$0xff]  ;;  %p304_p1 = scmp.ne.s32.totalorder %s171_s6, %s303_s7  ;;  %p309_p3 = scmp.lt.s32.totalorder %s303_s7, %s303_s7 }
  0x29   :  { %205 = vmatpush3.msra.mxu0 %v75_v1  ;;  %v66_v11 = vld [vmem:[#allocation5 + $0x28] sm:$0xff]  ;;  %v65_v12 = vld [vmem:[#allocation5 + $0x20] sm:$0xff]  ;;  %v64_v13 = vld [vmem:[#allocation5 + $0x18] sm:$0xff] }
  0x2a   :  { %206 = vmatprep.subr.mxu0 %v74_v2  ;;  %v63_v14 = vld [vmem:[#allocation5 + $0x10] sm:$0xff]  ;;  %v62_v15 = vld [vmem:[#allocation5 + $0x8] sm:$0xff]  ;;  %v61_v16 = vld [vmem:[#allocation5] sm:$0xff]  ;;  %p310_p4 = por %p309_p3, %p308_p2 }
  0x2b   :  { %207 = vmatpush3.msra.mxu0 %v74_v2  ;;  %v60_v17 = vld [vmem:[#allocation2 + $0x8] sm:$0xff]  ;;  %v183_v18 = vld [vmem:[%s389_s2] ss:$0 sm:$0xff]  ;;  %v160_v20 = vld [vmem:[#allocation7 + $0x8] sm:$0xff] }
  0x2c   :  { %208 = vmatprep.subr.mxu0 %v73_v3  ;;  %v159_v23 = vld [vmem:[#allocation7] sm:$0xff]  ;;  %p311_p5 = pnand %p310_p4, %p304_p1 }
  0x2d   :  { %209 = vmatpush3.msra.mxu0 %v73_v3 }
  0x2e   :  { %210 = vmatprep.subr.mxu0 %v72_v5 }
  0x2f   :  { %211 = vmatpush3.msra.mxu0 %v72_v5 }
  0x30   :  { %212 = vmatprep.subr.mxu0 %v71_v6 }
  0x31   :  { %213 = vmatpush3.msra.mxu0 %v71_v6 }
  0x32   :  { %214 = vmatprep.subr.mxu0 %v70_v7 }
  0x33   :  { %215 = vmatpush3.msra.mxu0 %v70_v7 }
  0x34   :  { %216 = vmatprep.subr.mxu0 %v69_v8 }
  0x35   :  { %217 = vmatpush3.msra.mxu0 %v69_v8 }
  0x36   :  { %218 = vmatprep.subr.mxu0 %v68_v9 }
  0x37   :  { %219 = vmatpush3.msra.mxu0 %v68_v9 }
  0x38   :  { %220 = vmatprep.subr.mxu0 %v67_v10 }
  0x39   :  { %221 = vmatpush3.msra.mxu0 %v67_v10 }
  0x3a   :  { %222 = vmatprep.subr.mxu0 %v66_v11 }
  0x3b   :  { %223 = vmatpush3.msra.mxu0 %v66_v11 }
  0x3c   :  { %224 = vmatprep.subr.mxu0 %v65_v12 }
  0x3d   :  { %225 = vmatpush3.msra.mxu0 %v65_v12 }
  0x3e   :  { %226 = vmatprep.subr.mxu0 %v64_v13 }
  0x3f   :  { %227 = vmatpush3.msra.mxu0 %v64_v13 }
  0x40   :  { %228 = vmatprep.subr.mxu0 %v63_v14 }
  0x41   :  { %229 = vmatpush3.msra.mxu0 %v63_v14 }
  0x42   :  { %230 = vmatprep.subr.mxu0 %v62_v15 }
  0x43   :  { %231 = vmatpush3.msra.mxu0 %v62_v15 }
  0x44   :  { %232 = vmatprep.subr.mxu0 %v61_v16 }
  0x45   :  { %233 = vmatpush3.msra.mxu0 %v61_v16 }
  0x46   :  { %235 = vmatmul.mubr.f32.vlgmr.msra.gmra.mxu0 %v60_v17 }
 0x106   :  { %v236_v19 = vpop.f32.mrf.mxu0 }
 0x107   :  { %v156_v21 = vadd.f32 %v236_v19, %v183_v18 }
 0x108   :  { %v150_v22 = vpop.f32.mrf.mxu0 }
 0x109   :  { %v162_v24 = vadd.f32 %v160_v20, %v156_v21  ;;  %v151_v25 = vadd.f32 %v183_v18, %v150_v22 }
 0x10b   :  { %164 = vst [vmem:[#allocation8 + $0x8] sm:$0xff] %v162_v24  ;;  %v161_v26 = vadd.f32 %v159_v23, %v151_v25 }
 0x10d   :  { %163 = vst [vmem:[#allocation8] sm:$0xff] %v161_v26 }
 0x10e   :  { %314 = shalt.err (!%p311_p5)
}
 0x10f   :  { %176 = dma.vmem_to_hbm [thread:$0]  %s171_s6, 256, %s391_s4, [#allocation4], %s331_s20, %s331_s20, %s332_s21  }
 0x110   :  { %327 = dma.done.wait [#allocation4], 256  }
 0x111   :  { %328 = vsyncadd [#allocation4], 4294967040 }
 0x112   :  { %180 = vsyncpa [#allocation3], 1 }
 0x113   :  { %181 = vsyncpa [#allocation6], 1 }
 0x114   :  { %182 = vsyncpa [#allocation4], 1 }

</bundles_post_ra>
